<compile_context>
chip_gen: v5e
topology: v5e:2x2
jax: 0.10.0
libtpu: 0.0.40
codegen_flags: <defaults>
</compile_context>

<pallas_src>
import jax
import jax.numpy as jnp
from jax.experimental import pallas as pl
from jax.experimental.pallas import tpu as pltpu


_TARGET_BLOCK_BYTES = 4 * 1024 * 1024      # ~4 MiB per grid step (2-8 MiB sweet spot)
_FOLD_WIDTHS = (2048, 1024, 512, 256, 128)  # lane-dense last-dim candidates
_DEFAULT_PALLAS_MIN_BYTES = 1 << 20         # below this, pallas_call is pure overhead


def _dynamic_system_kernel(x_ref, o_ref):
    # Placeholder vector field of the abstract DynamicSystem: identity.
    # Subclasses plug their (elementwise) dynamics f(x) into this body.
    o_ref[...] = x_ref[...]


def _apply_field_2d(x2d):
    """Run the vector-field kernel over a 2-D slab, tiled along rows.

    Works for any (rows, lanes) layout:
      * the block always spans the full last dim (lane-dense, unmasked vst
        when lanes is a multiple of 128),
      * rows are tiled into ~4 MiB blocks; a ragged final block is handled by
        Pallas with masked stores (no host-side padding).
    """
    rows, lanes = x2d.shape
    itemsize = jnp.dtype(x2d.dtype).itemsize

    max_rows_per_block = max(1, _TARGET_BLOCK_BYTES // (lanes * itemsize))
    if rows <= max_rows_per_block:
        tb = rows                               # single full-extent block
    else:
        tb = max(8, (max_rows_per_block // 8) * 8)  # multiple of 8 -> (8,128) rule

    grid = (pl.cdiv(rows, tb),)

    return pl.pallas_call(
        _dynamic_system_kernel,
        out_shape=jax.ShapeDtypeStruct((rows, lanes), x2d.dtype),
        grid=grid,
        in_specs=[pl.BlockSpec((tb, lanes), lambda i: (i, 0))],
        out_specs=pl.BlockSpec((tb, lanes), lambda i: (i, 0)),
        # Template note: for subclasses that update state in place, add
        #   input_output_aliases={0: 0}
        # so the output aliases the (donated) input buffer.
        compiler_params=pltpu.CompilerParams(
            dimension_semantics=("parallel",),
            vmem_limit_bytes=32 * 1024 * 1024,
        ),
    )(x2d)


class DynamicSystem:
    """JAX/Pallas port of liesvf.dynamic_systems.base_dynamic.DynamicSystem."""

    def __init__(self, dim, device=None, pallas_min_bytes=_DEFAULT_PALLAS_MIN_BYTES):
        self.dim = dim
        self.device = device
        # Inputs smaller than this bypass Pallas (identity base class: the
        # kernel would be 2-3 HBM passes + dispatch for zero compute).
        self._pallas_min_bytes = pallas_min_bytes

    def forward(self, x):
        # x: [batch, dim]
        batch, dim = x.shape
        assert dim == self.dim

        n = batch * dim
        itemsize = jnp.dtype(x.dtype).itemsize

        # ---- fast path: base-class identity on small inputs ----------------
        if n * itemsize < self._pallas_min_bytes:
            return x

        # ---- layout plumbing (no padding): lane-dense fold when exact ------
        # NOTE: the fold mixes rows across the (batch, dim) boundary, so it is
        # only valid for purely elementwise vector fields (true for the base
        # class / any elementwise subclass).  Structured per-sample dynamics
        # should run on the raw (batch, dim) layout instead.
        x2d = None
        for lanes in _FOLD_WIDTHS:
            if n % lanes == 0:
                x2d = jnp.reshape(x, (n // lanes, lanes))
                break
        if x2d is None:
            x2d = x  # dim not lane-foldable; full-dim blocks, ragged row tiles

        out2d = _apply_field_2d(x2d)
        return jnp.reshape(out2d, (batch, dim))

    def __call__(self, x):
        return self.forward(x)

    def potential(self, x):
        # TODO(synk): abstract in the reference module (returns None); no
        #             Pallas equivalent to implement.
        return None


if __name__ == "__main__":
    key = jax.random.PRNGKey(0)

    # 1) Small shape consistent with the module -> fast path (no Pallas).
    batch, dim = 8, 32
    x_small = jax.random.normal(key, (batch, dim), dtype=jnp.float32)
    ds_small = DynamicSystem(dim=dim)
    out_small = jax.block_until_ready(ds_small(x_small))
    assert out_small.shape == (batch, dim)
    assert out_small.dtype == x_small.dtype
    assert jnp.allclose(out_small, x_small)

    # 2) Force the Pallas path (threshold 0) at a still-small shape to
    #    exercise the kernel itself.
    batch2, dim2 = 256, 128
    x_pallas = jax.random.normal(jax.random.PRNGKey(0), (batch2, dim2),
                                 dtype=jnp.float32)
    ds_pallas = DynamicSystem(dim=dim2, pallas_min_bytes=0)
    out_pallas = jax.block_until_ready(ds_pallas(x_pallas))
    assert out_pallas.shape == (batch2, dim2)
    assert out_pallas.dtype == x_pallas.dtype
    assert jnp.allclose(out_pallas, x_pallas)

    print("KERNEL_OK")
</pallas_src>

<mosaic_0001>
module attributes {stable_mosaic.version = 11 : i64} {
  func.func @_dynamic_system_kernel(%arg0: i32, %arg1: memref<16x2048xf32, #tpu.memory_space<vmem>>, %arg2: memref<16x2048xf32, #tpu.memory_space<vmem>>) attributes {dimension_semantics = [#tpu.dimension_semantics<parallel>], iteration_bounds = array<i64: 1>, scalar_prefetch = 0 : i64, scratch_operands = 0 : i64, tpu.core_type = #tpu.core_type<tc>, window_params = [{transform_indices = @transform_0, window_bounds = array<i64: 16, 2048>}, {transform_indices = @transform_1, window_bounds = array<i64: 16, 2048>}]} {
    %c0 = arith.constant 0 : index
    %c0_0 = arith.constant 0 : index
    %0 = vector.load %arg1[%c0, %c0_0] : memref<16x2048xf32, #tpu.memory_space<vmem>>, vector<16x2048xf32>
    %c0_1 = arith.constant 0 : index
    %c0_2 = arith.constant 0 : index
    %1 = vector.load %arg2[%c0_1, %c0_2] : memref<16x2048xf32, #tpu.memory_space<vmem>>, vector<16x2048xf32>
    tpu.vector_store %arg2[%c0_1, %c0_2], %0 {strides = array<i32>} : memref<16x2048xf32, #tpu.memory_space<vmem>>, vector<16x2048xf32>,
    return
  }
  func.func @transform_0(%arg0: i32) -> (i32, i32) {
    %c0_i32 = arith.constant 0 : i32
    %c0_i32_0 = arith.constant 0 : i32
    return %arg0, %c0_i32 : i32, i32
  }
  func.func @transform_1(%arg0: i32) -> (i32, i32) {
    %c0_i32 = arith.constant 0 : i32
    %c0_i32_0 = arith.constant 0 : i32
    return %arg0, %c0_i32 : i32, i32
  }
}

</mosaic_0001>

<bundles_post_ra>
// kernel: tpu_custom_call.1
= control target key start
LH: loop header
LB: loop body
LE: loop exit
PB: predicated region body
PF: predicated region fallthrough
CT: control target
= control target key end

     0   :  { %6 = vsyncpa [#allocation3], 0  ;;  %s190_s0 = inlined_call_operand.hbm [shape: f32[16,2048], index: 0, kind: input, shape index: {}]   ;;  %s191_s1 = inlined_call_operand.hbm [shape: f32[16,2048], index: 1, kind: output, shape index: {}]  }
   0x1   :  { %7 = vsyncpa [#allocation4], 0  ;;  %s12_s8 = sshll.u32 %s190_s0, 4  ;;  %s164_s9 = smov [#allocation2]   ;;  %s13_s8 = int_to_ptr.hbm [resolvable:$true] %s12_s8 }
   0x2   :  { %s14_s10 = sshll.u32 %s164_s9, 4  ;;  %s165_s11 = smov 2048   ;;  %s15_s10 = int_to_ptr.vmem [resolvable:$true] %s14_s10 }
   0x3   :  { %s166_s12 = smov 128  }
   0x4   :  { %20 = dma.hbm_to_vmem [thread:$0]  %s13_s8, 4096, %s15_s10, [#allocation3], %s165_s11, %s165_s11, %s166_s12  }
   0x5   :  { %160 = dma.done.wait [#allocation3], 4096  }
   0x6   :  { %161 = vsyncadd [#allocation3], 4294963200  ;;  %v25_v0 = vld [vmem:[#allocation2] sm:$0xff]  ;;  %v26_v1 = vld [vmem:[#allocation2 + $0x8] sm:$0xff]  ;;  %s167_s0 = smov [#allocation5]   ;;  %s95_s16 = sshll.u32 %s191_s1, 4  ;;  %s96_s16 = int_to_ptr.hbm [resolvable:$true] %s95_s16 }
   0x7   :  { %v27_v2 = vld [vmem:[#allocation2 + $0x10] sm:$0xff]  ;;  %57 = vst [vmem:[#allocation5] sm:$0xff] %v25_v0  ;;  %v28_v3 = vld [vmem:[#allocation2 + $0x18] sm:$0xff]  ;;  %v29_v4 = vld [vmem:[#allocation2 + $0x20] sm:$0xff]  ;;  %s93_s13 = sshll.u32 %s167_s0, 4  ;;  %s94_s13 = int_to_ptr.vmem [resolvable:$true] %s93_s13 }
   0x8   :  { %58 = vst [vmem:[#allocation5 + $0x8] sm:$0xff] %v26_v1  ;;  %v30_v5 = vld [vmem:[#allocation2 + $0x28] sm:$0xff]  ;;  %v31_v6 = vld [vmem:[#allocation2 + $0x30] sm:$0xff]  ;;  %v32_v7 = vld [vmem:[#allocation2 + $0x38] sm:$0xff] }
   0x9   :  { %59 = vst [vmem:[#allocation5 + $0x10] sm:$0xff] %v27_v2  ;;  %v33_v8 = vld [vmem:[#allocation2 + $0x40] sm:$0xff]  ;;  %v34_v9 = vld [vmem:[#allocation2 + $0x48] sm:$0xff]  ;;  %v35_v10 = vld [vmem:[#allocation2 + $0x50] sm:$0xff] }
   0xa   :  { %60 = vst [vmem:[#allocation5 + $0x18] sm:$0xff] %v28_v3  ;;  %v36_v11 = vld [vmem:[#allocation2 + $0x58] sm:$0xff]  ;;  %v37_v12 = vld [vmem:[#allocation2 + $0x60] sm:$0xff]  ;;  %v38_v13 = vld [vmem:[#allocation2 + $0x68] sm:$0xff] }
   0xb   :  { %61 = vst [vmem:[#allocation5 + $0x20] sm:$0xff] %v29_v4  ;;  %v39_v14 = vld [vmem:[#allocation2 + $0x70] sm:$0xff]  ;;  %v40_v15 = vld [vmem:[#allocation2 + $0x78] sm:$0xff]  ;;  %v41_v16 = vld [vmem:[#allocation2 + $0x80] sm:$0xff] }
   0xc   :  { %62 = vst [vmem:[#allocation5 + $0x28] sm:$0xff] %v30_v5  ;;  %v42_v17 = vld [vmem:[#allocation2 + $0x88] sm:$0xff]  ;;  %v43_v18 = vld [vmem:[#allocation2 + $0x90] sm:$0xff]  ;;  %v44_v19 = vld [vmem:[#allocation2 + $0x98] sm:$0xff] }
   0xd   :  { %63 = vst [vmem:[#allocation5 + $0x30] sm:$0xff] %v31_v6  ;;  %v45_v20 = vld [vmem:[#allocation2 + $0xa0] sm:$0xff]  ;;  %v46_v21 = vld [vmem:[#allocation2 + $0xa8] sm:$0xff]  ;;  %v47_v22 = vld [vmem:[#allocation2 + $0xb0] sm:$0xff] }
   0xe   :  { %64 = vst [vmem:[#allocation5 + $0x38] sm:$0xff] %v32_v7  ;;  %v48_v23 = vld [vmem:[#allocation2 + $0xb8] sm:$0xff]  ;;  %v49_v24 = vld [vmem:[#allocation2 + $0xc0] sm:$0xff]  ;;  %v50_v25 = vld [vmem:[#allocation2 + $0xc8] sm:$0xff] }
   0xf   :  { %65 = vst [vmem:[#allocation5 + $0x40] sm:$0xff] %v33_v8  ;;  %v51_v26 = vld [vmem:[#allocation2 + $0xd0] sm:$0xff]  ;;  %v52_v27 = vld [vmem:[#allocation2 + $0xd8] sm:$0xff]  ;;  %v53_v28 = vld [vmem:[#allocation2 + $0xe0] sm:$0xff] }
  0x10   :  { %66 = vst [vmem:[#allocation5 + $0x48] sm:$0xff] %v34_v9  ;;  %v54_v29 = vld [vmem:[#allocation2 + $0xe8] sm:$0xff]  ;;  %v55_v30 = vld [vmem:[#allocation2 + $0xf0] sm:$0xff]  ;;  %v56_v31 = vld [vmem:[#allocation2 + $0xf8] sm:$0xff] }
  0x11   :  { %67 = vst [vmem:[#allocation5 + $0x50] sm:$0xff] %v35_v10 }
  0x12   :  { %68 = vst [vmem:[#allocation5 + $0x58] sm:$0xff] %v36_v11 }
  0x13   :  { %69 = vst [vmem:[#allocation5 + $0x60] sm:$0xff] %v37_v12 }
  0x14   :  { %70 = vst [vmem:[#allocation5 + $0x68] sm:$0xff] %v38_v13 }
  0x15   :  { %71 = vst [vmem:[#allocation5 + $0x70] sm:$0xff] %v39_v14 }
  0x16   :  { %72 = vst [vmem:[#allocation5 + $0x78] sm:$0xff] %v40_v15 }
  0x17   :  { %73 = vst [vmem:[#allocation5 + $0x80] sm:$0xff] %v41_v16 }
  0x18   :  { %74 = vst [vmem:[#allocation5 + $0x88] sm:$0xff] %v42_v17 }
  0x19   :  { %75 = vst [vmem:[#allocation5 + $0x90] sm:$0xff] %v43_v18 }
  0x1a   :  { %76 = vst [vmem:[#allocation5 + $0x98] sm:$0xff] %v44_v19 }
  0x1b   :  { %77 = vst [vmem:[#allocation5 + $0xa0] sm:$0xff] %v45_v20 }
  0x1c   :  { %78 = vst [vmem:[#allocation5 + $0xa8] sm:$0xff] %v46_v21 }
  0x1d   :  { %79 = vst [vmem:[#allocation5 + $0xb0] sm:$0xff] %v47_v22 }
  0x1e   :  { %80 = vst [vmem:[#allocation5 + $0xb8] sm:$0xff] %v48_v23 }
  0x1f   :  { %81 = vst [vmem:[#allocation5 + $0xc0] sm:$0xff] %v49_v24 }
  0x20   :  { %82 = vst [vmem:[#allocation5 + $0xc8] sm:$0xff] %v50_v25 }
  0x21   :  { %83 = vst [vmem:[#allocation5 + $0xd0] sm:$0xff] %v51_v26 }
  0x22   :  { %84 = vst [vmem:[#allocation5 + $0xd8] sm:$0xff] %v52_v27 }
  0x23   :  { %85 = vst [vmem:[#allocation5 + $0xe0] sm:$0xff] %v53_v28 }
  0x24   :  { %86 = vst [vmem:[#allocation5 + $0xe8] sm:$0xff] %v54_v29 }
  0x25   :  { %87 = vst [vmem:[#allocation5 + $0xf0] sm:$0xff] %v55_v30 }
  0x26   :  { %88 = vst [vmem:[#allocation5 + $0xf8] sm:$0xff] %v56_v31 }
  0x27   :  { %101 = dma.vmem_to_hbm [thread:$0]  %s94_s13, 4096, %s96_s16, [#allocation4], %s165_s11, %s165_s11, %s166_s12  }
  0x28   :  { %162 = dma.done.wait [#allocation4], 4096  }
  0x29   :  { %163 = vsyncadd [#allocation4], 4294963200 }
  0x2a   :  { %106 = vsyncpa [#allocation3], 1 }
  0x2b   :  { %107 = vsyncpa [#allocation4], 1 }

</bundles_post_ra>
